<compile_context>
chip_gen: v5e
topology: v5e:2x2
jax: 0.10.0
libtpu: 0.0.40
codegen_flags: <defaults>
</compile_context>

<pallas_src>
import functools

import jax
import jax.numpy as jnp
from jax.experimental import pallas as pl
from jax.experimental.pallas import tpu as pltpu


def _round_up(x, m):
    return (x + m - 1) // m * m


def _gather_logits(idx_block, table_f32):
    """One-hot @ table on the MXU: (TILE_N, 1) int32 ids -> (TILE_N, Vp) f32 logits."""
    tile_n = idx_block.shape[0]
    vp = table_f32.shape[1]
    col = jax.lax.broadcasted_iota(jnp.int32, (tile_n, vp), 1)
    onehot = (col == idx_block).astype(jnp.float32)
    logits = jnp.dot(onehot, table_f32, preferred_element_type=jnp.float32)
    return logits, col


def _bigram_logits_kernel(idx_ref, table_ref, logits_ref):
    """targets=None path: batched embedding lookup, one (TILE_N, Vp) block per step."""
    logits, _ = _gather_logits(idx_ref[...], table_ref[...])
    logits_ref[...] = logits.astype(logits_ref.dtype)


def _bigram_loss_kernel(idx_ref, tgt_ref, table_ref, logits_ref, loss_ref, *,
                        n_valid, vocab):
    """Loss path: batched lookup + per-block cross-entropy partial sum."""
    g = pl.program_id(0)
    tile_n = idx_ref.shape[0]

    logits, col = _gather_logits(idx_ref[...], table_ref[...])
    logits_ref[...] = logits.astype(logits_ref.dtype)

    # Numerically-stable logsumexp over the *real* vocab lanes only (pad lanes -> -inf).
    masked = jnp.where(col < vocab, logits, -jnp.inf)
    m = jnp.max(masked, axis=-1, keepdims=True)
    lse = m + jnp.log(jnp.sum(jnp.exp(masked - m), axis=-1, keepdims=True))

    # Target logit per row via broadcast compare + lane reduce (targets < vocab).
    tgt_logit = jnp.sum(jnp.where(col == tgt_ref[...], logits, jnp.float32(0.0)),
                        axis=-1, keepdims=True)

    # Mask out padded tokens, emit one partial sum per block.
    row = jax.lax.broadcasted_iota(jnp.int32, (tile_n, 1), 0)
    valid = ((g * tile_n + row) < n_valid).astype(jnp.float32)
    loss_ref[...] = jnp.sum((lse - tgt_logit) * valid, axis=0, keepdims=True)


def bigram_forward(idx, table, targets=None, *, tile_n=512):
    """Pallas implementation of BigramLanguageModel.forward."""
    B, T = idx.shape
    V = table.shape[1]
    N = B * T
    out_dtype = table.dtype

    TILE_N = min(tile_n, _round_up(N, 8))          # sublane-aligned token block
    Np = _round_up(N, TILE_N)
    G = Np // TILE_N
    Vp = _round_up(V, 128)                         # lane-dense vocab axis

    # Pad table to (Vp, Vp); it stays fully resident in VMEM (constant index_map).
    table_p = jnp.zeros((Vp, Vp), jnp.float32).at[:V, :V].set(table.astype(jnp.float32))

    idx_flat = idx.reshape(-1).astype(jnp.int32)
    idx_p = jnp.zeros((Np, 1), jnp.int32).at[:N, 0].set(idx_flat)

    table_spec = pl.BlockSpec((Vp, Vp), lambda g: (0, 0))
    tok_spec = pl.BlockSpec((TILE_N, 1), lambda g: (g, 0))
    logits_spec = pl.BlockSpec((TILE_N, Vp), lambda g: (g, 0))

    if targets is None:
        logits_p = pl.pallas_call(
            _bigram_logits_kernel,
            out_shape=jax.ShapeDtypeStruct((Np, Vp), out_dtype),
            grid_spec=pltpu.PrefetchScalarGridSpec(
                num_scalar_prefetch=0,
                grid=(G,),
                in_specs=[tok_spec, table_spec],
                out_specs=logits_spec),
            compiler_params=pltpu.CompilerParams(
                dimension_semantics=("parallel",)),
        )(idx_p, table_p)
        return logits_p[:N, :V].reshape(B, T, V), None

    tgt_flat = targets.reshape(-1).astype(jnp.int32)
    tgt_p = jnp.zeros((Np, 1), jnp.int32).at[:N, 0].set(tgt_flat)

    kernel = functools.partial(_bigram_loss_kernel, n_valid=N, vocab=V)
    logits_p, loss_part = pl.pallas_call(
        kernel,
        out_shape=(jax.ShapeDtypeStruct((Np, Vp), out_dtype),
                   jax.ShapeDtypeStruct((G, 1), jnp.float32)),
        grid_spec=pltpu.PrefetchScalarGridSpec(
            num_scalar_prefetch=0,
            grid=(G,),
            in_specs=[tok_spec, tok_spec, table_spec],
            out_specs=(logits_spec, pl.BlockSpec((1, 1), lambda g: (g, 0)))),
        compiler_params=pltpu.CompilerParams(
            dimension_semantics=("parallel",)),
    )(idx_p, tgt_p, table_p)

    # PyTorch returns the (B*T, C) view when targets are provided; mean over tokens.
    logits = logits_p[:N, :V]
    loss = jnp.sum(loss_part) / N
    return logits, loss


if __name__ == "__main__":
    # Deterministic "dataset" -> vocab, as in the original script.
    text = "hello pallas tpu kernel bigram world"
    chars = sorted(list(set(text)))
    vocab_size = len(chars)

    key = jax.random.PRNGKey(0)
    k_tab, k_idx, k_tgt = jax.random.split(key, 3)

    # nn.Embedding default init: N(0, 1)
    table = jax.random.normal(k_tab, (vocab_size, vocab_size), jnp.float32)

    B, T = 2, 8
    idx = jax.random.randint(k_idx, (B, T), 0, vocab_size, jnp.int32)
    targets = jax.random.randint(k_tgt, (B, T), 0, vocab_size, jnp.int32)

    # --- loss path ---
    logits, loss = bigram_forward(idx, table, targets)
    logits = jax.block_until_ready(logits)
    loss = jax.block_until_ready(loss)

    # Pure-JAX reference check.
    ref_logits = table[idx.reshape(-1)]
    ref_lse = jax.scipy.special.logsumexp(ref_logits, axis=-1)
    ref_loss = jnp.mean(ref_lse - ref_logits[jnp.arange(B * T), targets.reshape(-1)])
    assert logits.shape == (B * T, vocab_size)
    assert jnp.allclose(logits, ref_logits, atol=1e-5)
    assert jnp.allclose(loss, ref_loss, atol=1e-5)

    # --- targets=None path (logits only, shape (B, T, V)) ---
    logits_no_t, loss_none = bigram_forward(idx, table, None)
    logits_no_t = jax.block_until_ready(logits_no_t)
    assert logits_no_t.shape == (B, T, vocab_size)
    assert loss_none is None
    assert jnp.allclose(logits_no_t.reshape(B * T, vocab_size), ref_logits, atol=1e-5)

    print("KERNEL_OK")
</pallas_src>

<mosaic_0001>
module attributes {stable_mosaic.version = 11 : i64} {
  func.func @_bigram_loss_kernel(%arg0: i32, %arg1: memref<16x1xi32, #tpu.memory_space<vmem>>, %arg2: memref<16x1xi32, #tpu.memory_space<vmem>>, %arg3: memref<128x128xf32, #tpu.memory_space<vmem>>, %arg4: memref<16x128xf32, #tpu.memory_space<vmem>>, %arg5: memref<1x1xf32, #tpu.memory_space<vmem>>) attributes {dimension_semantics = [#tpu.dimension_semantics<parallel>], iteration_bounds = array<i64: 1>, scalar_prefetch = 0 : i64, scratch_operands = 0 : i64, tpu.core_type = #tpu.core_type<tc>, window_params = [{transform_indices = @transform_0, window_bounds = array<i64: 16, 1>}, {transform_indices = @transform_1, window_bounds = array<i64: 16, 1>}, {pipeline_mode = #tpu.pipeline_mode<synchronous>, transform_indices = @transform_2, window_bounds = array<i64: 128, 128>}, {transform_indices = @transform_3, window_bounds = array<i64: 16, 128>}, {transform_indices = @transform_4, window_bounds = array<i64: 1, 1>}]} {
    %c0 = arith.constant 0 : index
    %c0_0 = arith.constant 0 : index
    %0 = vector.load %arg1[%c0, %c0_0] : memref<16x1xi32, #tpu.memory_space<vmem>>, vector<16x1xi32>
    %c0_1 = arith.constant 0 : index
    %c0_2 = arith.constant 0 : index
    %1 = vector.load %arg3[%c0_1, %c0_2] : memref<128x128xf32, #tpu.memory_space<vmem>>, vector<128x128xf32>
    %2 = tpu.iota {dimensions = array<i32: 1>} : vector<16x128xi32>
    %3 = vector.broadcast %0 : vector<16x1xi32> to vector<16x128xi32>
    %4 = arith.cmpi eq, %2, %3 : vector<16x128xi32>
    %5 = arith.extui %4 : vector<16x128xi1> to vector<16x128xi32>
    %6 = arith.sitofp %5 : vector<16x128xi32> to vector<16x128xf32>
    %cst = arith.constant dense<0.000000e+00> : vector<16x128xf32>
    %7 = tpu.matmul %6, %1, %cst {dimension_numbers = #tpu.dot_dimension_numbers<[1], [0], [0], [1], [0, 0, 1, 1], [], []>} : vector<16x128xf32>, vector<128x128xf32>, vector<16x128xf32> -> vector<16x128xf32>
    %c0_3 = arith.constant 0 : index
    %c0_4 = arith.constant 0 : index
    %8 = vector.load %arg4[%c0_3, %c0_4] : memref<16x128xf32, #tpu.memory_space<vmem>>, vector<16x128xf32>
    tpu.vector_store %arg4[%c0_3, %c0_4], %7 {strides = array<i32>} : memref<16x128xf32, #tpu.memory_space<vmem>>, vector<16x128xf32>,
    %c19_i32 = arith.constant 19 : i32
    %9 = vector.broadcast %c19_i32 : i32 to vector<16x128xi32>
    %10 = arith.cmpi slt, %2, %9 : vector<16x128xi32>
    %cst_5 = arith.constant 0xFF800000 : f32
    %11 = vector.broadcast %cst_5 : f32 to vector<16x128xf32>
    %12 = arith.select %10, %7, %11 : vector<16x128xi1>, vector<16x128xf32>
    %cst_6 = arith.constant dense<0xFF800000> : vector<16xf32>
    %13 = vector.multi_reduction <maximumf>, %12, %cst_6 [1] : vector<16x128xf32> to vector<16xf32>
    %14 = vector.shape_cast %13 : vector<16xf32> to vector<16x1xf32>
    %15 = vector.broadcast %14 : vector<16x1xf32> to vector<16x128xf32>
    %16 = arith.subf %12, %15 : vector<16x128xf32>
    %17 = math.exp %16 : vector<16x128xf32>
    %cst_7 = arith.constant dense<0.000000e+00> : vector<16xf32>
    %18 = vector.multi_reduction <add>, %17, %cst_7 [1] : vector<16x128xf32> to vector<16xf32>
    %19 = vector.shape_cast %18 : vector<16xf32> to vector<16x1xf32>
    %20 = math.log %19 : vector<16x1xf32>
    %21 = arith.addf %14, %20 : vector<16x1xf32>
    %c0_8 = arith.constant 0 : index
    %c0_9 = arith.constant 0 : index
    %22 = vector.load %arg2[%c0_8, %c0_9] : memref<16x1xi32, #tpu.memory_space<vmem>>, vector<16x1xi32>
    %23 = vector.broadcast %22 : vector<16x1xi32> to vector<16x128xi32>
    %24 = arith.cmpi eq, %2, %23 : vector<16x128xi32>
    %cst_10 = arith.constant 0.000000e+00 : f32
    %25 = vector.broadcast %cst_10 : f32 to vector<16x128xf32>
    %26 = arith.select %24, %7, %25 : vector<16x128xi1>, vector<16x128xf32>
    %cst_11 = arith.constant dense<0.000000e+00> : vector<16xf32>
    %27 = vector.multi_reduction <add>, %26, %cst_11 [1] : vector<16x128xf32> to vector<16xf32>
    %28 = vector.shape_cast %27 : vector<16xf32> to vector<16x1xf32>
    %29 = tpu.iota {dimensions = array<i32: 0>} : vector<16x1xi32>
    %c16_i32 = arith.constant 16 : i32
    %30 = arith.muli %arg0, %c16_i32 : i32
    %31 = vector.broadcast %30 : i32 to vector<16x1xi32>
    %32 = arith.addi %31, %29 : vector<16x1xi32>
    %c16_i32_12 = arith.constant 16 : i32
    %33 = vector.broadcast %c16_i32_12 : i32 to vector<16x1xi32>
    %34 = arith.cmpi slt, %32, %33 : vector<16x1xi32>
    %35 = arith.extui %34 : vector<16x1xi1> to vector<16x1xi32>
    %36 = arith.sitofp %35 : vector<16x1xi32> to vector<16x1xf32>
    %37 = arith.subf %21, %28 : vector<16x1xf32>
    %38 = arith.mulf %37, %36 : vector<16x1xf32>
    %cst_13 = arith.constant dense<0.000000e+00> : vector<1xf32>
    %39 = vector.multi_reduction <add>, %38, %cst_13 [0] : vector<16x1xf32> to vector<1xf32>
    %40 = vector.shape_cast %39 : vector<1xf32> to vector<1x1xf32>
    %c0_14 = arith.constant 0 : index
    %c0_15 = arith.constant 0 : index
    %41 = vector.load %arg5[%c0_14, %c0_15] : memref<1x1xf32, #tpu.memory_space<vmem>>, vector<1x1xf32>
    tpu.vector_store %arg5[%c0_14, %c0_15], %40 {strides = array<i32>} : memref<1x1xf32, #tpu.memory_space<vmem>>, vector<1x1xf32>,
    return
  }
  func.func @transform_0(%arg0: i32) -> (i32, i32) {
    %c0_i32 = arith.constant 0 : i32
    %c0_i32_0 = arith.constant 0 : i32
    return %arg0, %c0_i32 : i32, i32
  }
  func.func @transform_1(%arg0: i32) -> (i32, i32) {
    %c0_i32 = arith.constant 0 : i32
    %c0_i32_0 = arith.constant 0 : i32
    return %arg0, %c0_i32 : i32, i32
  }
  func.func @transform_2(%arg0: i32) -> (i32, i32) {
    %c0_i32 = arith.constant 0 : i32
    %c0_i32_0 = arith.constant 0 : i32
    %c0_i32_1 = arith.constant 0 : i32
    return %c0_i32, %c0_i32_0 : i32, i32
  }
  func.func @transform_3(%arg0: i32) -> (i32, i32) {
    %c0_i32 = arith.constant 0 : i32
    %c0_i32_0 = arith.constant 0 : i32
    return %arg0, %c0_i32 : i32, i32
  }
  func.func @transform_4(%arg0: i32) -> (i32, i32) {
    %c0_i32 = arith.constant 0 : i32
    %c0_i32_0 = arith.constant 0 : i32
    return %arg0, %c0_i32 : i32, i32
  }
}

</mosaic_0001>

<bundles_post_ra>
// kernel: tpu_custom_call.1
= control target key start
LH: loop header
LB: loop body
LE: loop exit
PB: predicated region body
PF: predicated region fallthrough
CT: control target
= control target key end

     0   :  { %10 = vsyncpa [#allocation3], 0  ;;  %s365_s0 = inlined_call_operand.vmem [shape: s32[16,1], index: 0, kind: input, shape index: {}]   ;;  %s366_s1 = inlined_call_operand.vmem [shape: s32[16,1], index: 1, kind: input, shape index: {}]   ;;  %s367_s2 = inlined_call_operand.hbm [shape: f32[128,128], index: 2, kind: input, shape index: {}]   ;;  %s368_s3 = inlined_call_operand.hbm [shape: f32[16,128], index: 3, kind: output, shape index: {0}]   ;;  %s369_s4 = inlined_call_operand.hbm [shape: f32[1,1], index: 4, kind: output, shape index: {1}]  }
   0x1   :  { %11 = vsyncpa [#allocation4], 0 }
   0x2   :  { %12 = vsyncpa [#allocation7], 0  ;;  %s21_s17 = sshll.u32 %s367_s2, 4  ;;  %s306_s18 = smov [#allocation2]   ;;  %s22_s17 = int_to_ptr.hbm [resolvable:$true] %s21_s17 }
   0x3   :  { %s23_s19 = sshll.u32 %s306_s18, 4  ;;  %s307_s20 = smov 128   ;;  %s24_s19 = int_to_ptr.vmem [resolvable:$true] %s23_s19 }
   0x4   :  { %s308_s21 = smov 8  }
   0x5   :  { %29 = dma.hbm_to_vmem [thread:$0]  %s22_s17, 2048, %s24_s19, [#allocation3], %s307_s20, %s307_s20, %s308_s21  }
   0x6   :  { %300 = dma.done.wait [#allocation3], 2048  }
   0x7   :  { %301 = vsyncadd [#allocation3], 4294965248  ;;  %v309_v0 = vmov 0   ;;  %v34_v1 = vld [vmem:[%s365_s0] sm:$0xff]  ;;  %v51_v2 = vld [vmem:[#allocation2 + $0x78] sm:$0xff]  ;;  %v52_v21 = vlaneseq  ;;  %v310_v24 = vmov 1.0  }
   0x8   :  { %218 = vset.pattern.permute.xlu0 %v309_v0  ;;  %219 = vset.pattern.permute.xlu2 %v309_v0  ;;  %v50_v3 = vld [vmem:[#allocation2 + $0x70] sm:$0xff]  ;;  %v49_v4 = vld [vmem:[#allocation2 + $0x68] sm:$0xff]  ;;  %v48_v5 = vld [vmem:[#allocation2 + $0x60] sm:$0xff]  ;;  %s162_s29 = sshll.u32 %s368_s3, 4  ;;  %s311_s30 = smov [#allocation5]   ;;  %vm154_vm5 = vcmask 0   ;;  %s163_s29 = int_to_ptr.hbm [resolvable:$true] %s162_s29 }
   0x9   :  { %55 = vperm.xlu0 %218, %v34_v1   ;;  %66 = vmatpush.msra.mxu0 %v51_v2  ;;  %v35_v6 = vld [vmem:[%s365_s0 + $0x8] sm:$0xff]  ;;  %v47_v7 = vld [vmem:[#allocation2 + $0x58] sm:$0xff]  ;;  %v46_v8 = vld [vmem:[#allocation2 + $0x50] sm:$0xff]  ;;  %v53_v22 = vand.u32 127, %v52_v21  ;;  %s160_s5 = sshll.u32 %s311_s30, 4  ;;  %s312_s3 = smov [#allocation6]   ;;  %s161_s5 = int_to_ptr.vmem [resolvable:$true] %s160_s5 }
   0xa   :  { %195 = vmatpush.msra.mxu1 %v51_v2  ;;  %v45_v9 = vld [vmem:[#allocation2 + $0x48] sm:$0xff]  ;;  %v44_v10 = vld [vmem:[#allocation2 + $0x40] sm:$0xff]  ;;  %v43_v11 = vld [vmem:[#allocation2 + $0x38] sm:$0xff]  ;;  %s174_s6 = sshll.u32 %s312_s3, 4  ;;  %s176_s9 = sshll.u32 %s369_s4, 4  ;;  %s175_s6 = int_to_ptr.vmem [resolvable:$true] %s174_s6  ;;  %s177_s9 = int_to_ptr.hbm [resolvable:$true] %s176_s9 }
   0xb   :  { %67 = vmatpush.msra.mxu0 %v50_v3  ;;  %v42_v12 = vld [vmem:[#allocation2 + $0x30] sm:$0xff]  ;;  %v41_v13 = vld [vmem:[#allocation2 + $0x28] sm:$0xff]  ;;  %v40_v14 = vld [vmem:[#allocation2 + $0x20] sm:$0xff]  ;;  %vm91_vm3 = vcmp.lt.s32.totalorder %v53_v22, 19 }
   0xc   :  { %196 = vmatpush.msra.mxu1 %v50_v3  ;;  %v39_v15 = vld [vmem:[#allocation2 + $0x18] sm:$0xff]  ;;  %v38_v16 = vld [vmem:[#allocation2 + $0x10] sm:$0xff]  ;;  %v37_v17 = vld [vmem:[#allocation2 + $0x8] sm:$0xff] }
   0xd   :  { %68 = vmatpush.msra.mxu0 %v49_v4  ;;  %v36_v18 = vld [vmem:[#allocation2] sm:$0xff]  ;;  %v115_v20 = vld [vmem:[%s366_s1 + $0x8] sm:$0xff] }
   0xe   :  { %197 = vmatpush.msra.mxu1 %v49_v4  ;;  %v114_v19 = vld [vmem:[%s366_s1] sm:$0xff] }
   0xf   :  { %69 = vmatpush.msra.mxu0 %v48_v5  ;;  %117 = vperm.xlu2 %219, %v114_v19  }
  0x10   :  { %198 = vmatpush.msra.mxu1 %v48_v5 }
  0x11   :  { %58 = vperm.xlu0 %218, %v35_v6   ;;  %70 = vmatpush.msra.mxu0 %v47_v7 }
  0x12   :  { %199 = vmatpush.msra.mxu1 %v47_v7 }
  0x13   :  { %71 = vmatpush.msra.mxu0 %v46_v8 }
  0x14   :  { %200 = vmatpush.msra.mxu1 %v46_v8 }
  0x15   :  { %72 = vmatpush.msra.mxu0 %v45_v9 }
  0x16   :  { %201 = vmatpush.msra.mxu1 %v45_v9 }
  0x17   :  { %73 = vmatpush.msra.mxu0 %v44_v10  ;;  %120 = vperm.xlu2 %219, %v115_v20  }
  0x18   :  { %202 = vmatpush.msra.mxu1 %v44_v10 }
  0x19   :  { %74 = vmatpush.msra.mxu0 %v43_v11 }
  0x1a   :  { %203 = vmatpush.msra.mxu1 %v43_v11 }
  0x1b   :  { %75 = vmatpush.msra.mxu0 %v42_v12 }
  0x1c   :  { %204 = vmatpush.msra.mxu1 %v42_v12 }
  0x1d   :  { %76 = vmatpush.msra.mxu0 %v41_v13 }
  0x1e   :  { %205 = vmatpush.msra.mxu1 %v41_v13 }
  0x1f   :  { %77 = vmatpush.msra.mxu0 %v40_v14 }
  0x20   :  { %206 = vmatpush.msra.mxu1 %v40_v14 }
  0x21   :  { %78 = vmatpush.msra.mxu0 %v39_v15 }
  0x22   :  { %207 = vmatpush.msra.mxu1 %v39_v15 }
  0x23   :  { %79 = vmatpush.msra.mxu0 %v38_v16 }
  0x24   :  { %208 = vmatpush.msra.mxu1 %v38_v16 }
  0x25   :  { %80 = vmatpush.msra.mxu0 %v37_v17 }
  0x26   :  { %209 = vmatpush.msra.mxu1 %v37_v17 }
  0x27   :  { %81 = vmatpush.msra.mxu0 %v36_v18 }
  0x28   :  { %210 = vmatpush.msra.mxu1 %v36_v18 }
  0x69   :  { %v118_v26 = vpop.permute.xlu2 %117 }
  0x6a   :  { %vm122_vm2 = vcmp.eq.s32.totalorder %v53_v22, %v118_v26 }
  0x71   :  { %v121_v40 = vpop.permute.xlu2 %120 }
  0x72   :  { %vm123_vm4 = vcmp.eq.s32.totalorder %v53_v22, %v121_v40 }
  0x7b   :  { %v56_v23 = vpop.permute.xlu0 %55 }
  0x7c   :  { %vm60_vm0 = vcmp.eq.s32.totalorder %v53_v22, %v56_v23 }
  0x7d   :  { %193 = vmatmul.msk.f32.vlgmr.msra.gmra.mxu0 %vm60_vm0, %v310_v24 }
  0x83   :  { %v59_v25 = vpop.permute.xlu0 %58 }
  0x84   :  { %vm61_vm1 = vcmp.eq.s32.totalorder %v53_v22, %v59_v25 }
  0x85   :  { %194 = vmatmul.msk.f32.vlgmr.msra.gmra.mxu1 %vm61_vm1, %v310_v24 }
  0xfa   :  { %v83_v27 = vpop.f32.mrf.mxu0 }
  0xfb   :  { %89 = vst [vmem:[#allocation5] sm:$0xff] %v83_v27  ;;  %v124_v28 = vsel %vm122_vm2, %v83_v27, 0.0  ;;  %v92_v29 = vsel %vm91_vm3, %v83_v27, -inf }
  0xfc   :  { %126 = vadd.xlane.f32.xlu2 %v124_v28  ;;  %94 = vmax.xlane.f32.xlu1 %v92_v29 }
 0x102   :  { %v86_v30 = vpop.f32.mrf.mxu1 }
 0x103   :  { %90 = vst [vmem:[#allocation5 + $0x8] sm:$0xff] %v86_v30  ;;  %v93_v31 = vsel %vm91_vm3, %v86_v30, -inf  ;;  %v125_v41 = vsel %vm123_vm4, %v86_v30, 0.0 }
 0x104   :  { %96 = vmax.xlane.f32.xlu1 %v93_v31  ;;  %168 = dma.vmem_to_hbm [thread:$0]  %s161_s5, 256, %s163_s29, [#allocation4], %s307_s20, %s307_s20, %s308_s21  }
 0x16f   :  { %v95_v32 = vpop.xlane.xlu1 %94  ;;  %v127_v50 = vpop.xlane.xlu2 %126 }
 0x170   :  { %v98_v33 = vsub.f32 %v92_v29, %v95_v32 }
 0x172   :  { %v100_v34 = vmul.f32 1.442695, %v98_v33 }
 0x174   :  { %220 = vpow2.f32 %v100_v34 }
 0x177   :  { %v97_v35 = vpop.xlane.xlu1 %96 }
 0x178   :  { %v99_v36 = vsub.f32 %v93_v31, %v97_v35 }
 0x17a   :  { %v221_v37 = vpop.eup %220  ;;  %v102_v38 = vmul.f32 1.442695, %v99_v36 }
 0x17b   :  { %104 = vadd.xlane.f32.xlu0 %v221_v37 }
 0x17c   :  { %222 = vpow2.f32 %v102_v38 }
 0x182   :  { %v223_v39 = vpop.eup %222 }
 0x183   :  { %106 = vadd.xlane.f32.xlu1 %v223_v39 }
 0x18b   :  { %128 = vadd.xlane.f32.xlu1 %v125_v41 }
 0x1ee   :  { %v105_v42 = vpop.xlane.xlu0 %104 }
 0x1ef   :  { %224 = vlog2.f32 %v105_v42 }
 0x1f5   :  { %v225_v44 = vpop.eup %224 }
 0x1f6   :  { %v107_v43 = vpop.xlane.xlu1 %106  ;;  %v109_v45 = vmul.f32 0.6931472, %v225_v44 }
 0x1f7   :  { %226 = vlog2.f32 %v107_v43 }
 0x1f8   :  { %v112_v47 = vadd.f32 %v109_v45, %v95_v32 }
 0x1fa   :  { %v143_v52 = vsub.f32 %v112_v47, %v127_v50 }
 0x1fd   :  { %v227_v46 = vpop.eup %226 }
 0x1fe   :  { %v111_v48 = vmul.f32 0.6931472, %v227_v46  ;;  %v129_v51 = vpop.xlane.xlu1 %128 }
 0x200   :  { %v113_v49 = vadd.f32 %v111_v48, %v97_v35 }
 0x202   :  { %v144_v53 = vsub.f32 %v113_v49, %v129_v51 }
 0x204   :  { %v147_v54 = vadd.f32 %v144_v53, %v143_v52 }
 0x206   :  { %v148_v55 = vrot.slane %v147_v54, 4 }
 0x208   :  { %v149_v56 = vadd.f32 %v148_v55, %v147_v54 }
 0x20a   :  { %v150_v57 = vrot.slane %v149_v56, 2 }
 0x20c   :  { %v151_v58 = vadd.f32 %v150_v57, %v149_v56 }
 0x20e   :  { %v152_v59 = vrot.slane %v151_v58, 1 }
 0x210   :  { %v153_v60 = vadd.f32 %v152_v59, %v151_v58 }
 0x212   :  { %155 = vst.msk [vmem:[#allocation6] sm:$0x1] %vm154_vm5, %v153_v60 }
 0x213   :  { %179 = dma.vmem_to_hbm [thread:$0]  %s175_s6, 16, %s177_s9, [#allocation7]  }
 0x214   :  { %302 = dma.done.wait [#allocation4], 256  }
 0x215   :  { %303 = vsyncadd [#allocation4], 4294967040 }
 0x216   :  { %304 = dma.done.wait [#allocation7], 16  }
 0x217   :  { %305 = vsyncadd [#allocation7], 4294967280 }
 0x218   :  { %188 = vsyncpa [#allocation3], 1 }
 0x219   :  { %189 = vsyncpa [#allocation4], 1 }
 0x21a   :  { %190 = vsyncpa [#allocation7], 1 }

</bundles_post_ra>
